<compile_context>
chip_gen: v7x
topology: tpu7x:2x2x1
jax: 0.10.0
libtpu: 0.0.40
codegen_flags: <defaults>
</compile_context>

<pallas_src>
import functools

import jax
import jax.numpy as jnp
import numpy as np
from jax import lax
from jax.experimental import pallas as pl
from jax.experimental.pallas import tpu as pltpu

NUM_LAYERS = 2   # module default
LN_EPS = 1e-5    # nn.LayerNorm default


# ----------------------------------------------------------------------------- helpers
def _round_up(x, m):
    return ((x + m - 1) // m) * m


def _itemsize(dt):
    return jnp.dtype(dt).itemsize


def _chip_vmem_bytes():
    """Physical VMEM per TensorCore (128 MiB on v5e/v6e, 64 MiB on v7x)."""
    try:
        info = pltpu.get_tpu_info()
        for attr in ("vmem_capacity_bytes", "vmem_size_bytes", "vmem_bytes"):
            v = getattr(info, attr, None)
            if v:
                return int(v)
    except Exception:
        pass
    return 64 << 20          # conservative fallback: fits every generation


def _vmem_limit(estimate_bytes, chip_vmem):
    """Scoped-VMEM request: actual footprint + slack, capped below physical VMEM."""
    return int(min(max(int(estimate_bytes * 1.25) + (8 << 20), 32 << 20),
                   int(chip_vmem * 0.9)))


def _plan_tiles(R, K, N, x_it, w_it, o_it, budget, extra_row_bytes=0):
    """Pick (tm, tn) so the double-buffered working set fits `budget`.

    tm is maximized first (it controls how many times the [K, N] weight is
    re-streamed from HBM -> arithmetic intensity of the projection), then tn.
    """
    r_cap = _round_up(max(R, 8), 8)
    tm_cands = [c for c in (1024, 512, 256, 128, 64, 32, 16, 8) if c <= r_cap] or [8]
    tn_cands = [c for c in (1024, 512, 256, 128) if c <= _round_up(N, 128)] or [128]
    for tm in tm_cands:
        for tn in tn_cands:
            fp = (2 * tm * K * x_it + 2 * K * tn * w_it + 2 * tn * 4
                  + 2 * tm * tn * o_it + tm * extra_row_bytes + (2 << 20))
            if fp <= budget:
                return tm, tn
    return tm_cands[-1], tn_cands[-1]


def _plan_time_chunk(T, Bc, H, pg_it, h1_it, w_it, budget, max_tc):
    """Largest time chunk whose double-buffered working set fits `budget` (VMEM-aware Tc)."""
    fixed = (2 * (H * 4 * H + 2 * H * 4 * H) * w_it + 2 * 4 * H * 4
             + 6 * NUM_LAYERS * Bc * H * 4 + (2 << 20))
    per_tc = 2 * Bc * 4 * H * pg_it + 2 * Bc * H * h1_it
    for tc in (c for c in (64, 32, 16, 8, 4, 2, 1) if c <= max_tc):
        if fixed + tc * per_tc <= budget:
            return tc
    return 1


# ----------------------------------------------------------------------------- kernels
def _matmul_bias_kernel(x_ref, w_ref, b_ref, o_ref):
    """One (tm, tn) tile of  X @ W + b  with f32 accumulation."""
    acc = jnp.dot(x_ref[...], w_ref[...], preferred_element_type=jnp.float32)
    o_ref[...] = (acc + b_ref[...]).astype(o_ref.dtype)


def _ln_proj_kernel(h_ref, gamma_ref, beta_ref, w_ref, b_ref, o_ref, y_sc):
    """Fused LayerNorm(H) + (tm, tn) tile of the vocab projection.

    The row-tile block index is constant across the inner vocab axis, so the
    LayerNorm'd tile is computed once (j == 0), cached in VMEM scratch and
    reused for every vocab tile.
    """
    @pl.when(pl.program_id(1) == 0)
    def _():
        h = h_ref[...].astype(jnp.float32)                   # LN statistics in f32
        mu = jnp.mean(h, axis=-1, keepdims=True)
        var = jnp.mean(jnp.square(h - mu), axis=-1, keepdims=True)
        y = (h - mu) * lax.rsqrt(var + LN_EPS)
        y_sc[...] = (y * gamma_ref[...] + beta_ref[...]).astype(y_sc.dtype)

    acc = jnp.dot(y_sc[...], w_ref[...], preferred_element_type=jnp.float32)
    o_ref[...] = (acc + b_ref[...]).astype(o_ref.dtype)


def _lstm_recurrent_kernel(pg_ref,                     # (Tc, Bc, 4H) layer-0 x-gates (+bias)
                           whh0_ref, w1_ref, b1_ref,   # resident recurrent weights
                           h1_ref,                     # (Tc, Bc, H) layer-1 hidden per step
                           hn_ref, cn_ref,             # (L, Bc, H) final states (resident)
                           h_sc, c_sc,                 # (L, Bc, H) f32 state scratch
                           *, t_total, mask_time, fuse_layer1):
    Tc, Bc, G = pg_ref.shape
    H = G // 4
    cdt = whh0_ref.dtype                               # MXU operand dtype (f32 or bf16)

    @pl.when(pl.program_id(1) == 0)                    # new batch chunk -> zero initial state
    def _():
        h_sc[...] = jnp.zeros_like(h_sc)
        c_sc[...] = jnp.zeros_like(c_sc)

    # Loop-invariant operands hoisted out of the unrolled time loop
    # (JAX does not CSE broadcast_in_dim / repeated ref loads across unrolled iterations).
    whh0 = whh0_ref[...]
    bias1 = jnp.broadcast_to(b1_ref[...].astype(jnp.float32), (Bc, 4 * H))
    if fuse_layer1:
        w1 = w1_ref[...]                               # (2H, 4H) fused [W_ih1; W_hh1]
    else:
        w1a = w1_ref[0:H, :]
        w1b = w1_ref[H:2 * H, :]
    t0 = pl.program_id(1) * Tc

    def gates_to_hc(g, c_prev):
        # PyTorch gate order: i, f, g, o — element-wise math stays in f32 (VPU/EUP path).
        i = jax.nn.sigmoid(g[:, 0 * H:1 * H])
        f = jax.nn.sigmoid(g[:, 1 * H:2 * H])
        gg = jnp.tanh(g[:, 2 * H:3 * H])
        o = jax.nn.sigmoid(g[:, 3 * H:4 * H])
        c_new = f * c_prev + i * gg
        return o * jnp.tanh(c_new), c_new

    def step(tc, carry):
        h0, c0, h1, c1 = carry
        # layer 0: x-contribution + fused bias precomputed outside the serial loop
        g0 = pg_ref[tc].astype(jnp.float32) + jnp.dot(
            h0.astype(cdt), whh0, preferred_element_type=jnp.float32)
        h0n, c0n = gates_to_hc(g0, c0)
        # layer 1 (inter-layer dropout is identity in eval mode)
        if fuse_layer1:
            # single fused (Bc,2H)@(2H,4H) push -> half the MXU pushes on the serial path
            h01 = jnp.concatenate([h0n, h1], axis=-1).astype(cdt)
            g1 = jnp.dot(h01, w1, preferred_element_type=jnp.float32) + bias1
        else:
            g1 = (jnp.dot(h0n.astype(cdt), w1a, preferred_element_type=jnp.float32)
                  + jnp.dot(h1.astype(cdt), w1b, preferred_element_type=jnp.float32)
                  + bias1)
        h1n, c1n = gates_to_hc(g1, c1)
        if mask_time:                                   # padded tail steps must not touch state
            valid = (t0 + tc) < t_total
            h0n = jnp.where(valid, h0n, h0)
            c0n = jnp.where(valid, c0n, c0)
            h1n = jnp.where(valid, h1n, h1)
            c1n = jnp.where(valid, c1n, c1)
        h1_ref[tc] = h1n.astype(h1_ref.dtype)
        return h0n, c0n, h1n, c1n

    carry0 = (h_sc[0], c_sc[0], h_sc[1], c_sc[1])
    h0, c0, h1, c1 = lax.fori_loop(0, Tc, step, carry0, unroll=True)
    h_sc[0] = h0
    c_sc[0] = c0
    h_sc[1] = h1
    c_sc[1] = c1

    @pl.when(pl.program_id(1) == pl.num_programs(1) - 1)
    def _():
        hn_ref[...] = h_sc[...].astype(hn_ref.dtype)
        cn_ref[...] = c_sc[...].astype(cn_ref.dtype)


# ----------------------------------------------------------------------------- tiled wrappers
def _tiled_matmul_bias(x, w, b, out_dtype=jnp.float32):
    """X[R,K] @ W[K,N] + b[1,N]; fully parallel (rows, cols) grid, padded to tile multiples."""
    R, K = x.shape
    N = w.shape[1]
    chip = _chip_vmem_bytes()
    tm, tn = _plan_tiles(R, K, N, _itemsize(x.dtype), _itemsize(w.dtype),
                         _itemsize(out_dtype), budget=int(chip * 0.55))
    R_pad, N_pad = _round_up(R, tm), _round_up(N, tn)
    if R_pad != R:
        x = jnp.pad(x, ((0, R_pad - R), (0, 0)))
    if N_pad != N:
        w = jnp.pad(w, ((0, 0), (0, N_pad - N)))
        b = jnp.pad(b, ((0, 0), (0, N_pad - N)))
    est = (2 * tm * K * _itemsize(x.dtype) + 2 * K * tn * _itemsize(w.dtype)
           + 2 * tn * 4 + 2 * tm * tn * _itemsize(out_dtype))
    out = pl.pallas_call(
        _matmul_bias_kernel,
        out_shape=jax.ShapeDtypeStruct((R_pad, N_pad), out_dtype),
        grid_spec=pltpu.PrefetchScalarGridSpec(
            num_scalar_prefetch=0,
            grid=(R_pad // tm, N_pad // tn),
            in_specs=[
                pl.BlockSpec((tm, K), lambda i, j: (i, 0)),
                pl.BlockSpec((K, tn), lambda i, j: (0, j)),
                pl.BlockSpec((1, tn), lambda i, j: (0, j)),
            ],
            out_specs=pl.BlockSpec((tm, tn), lambda i, j: (i, j)),
        ),
        compiler_params=pltpu.CompilerParams(
            dimension_semantics=("parallel", "parallel"),
            vmem_limit_bytes=_vmem_limit(est, chip)),
    )(x, w, b)
    if R_pad != R or N_pad != N:
        out = out[:R, :N]
    return out


def _tiled_ln_proj(h, gamma, beta, w, b, ln_dtype, out_dtype=jnp.float32):
    """LayerNorm(H) fused with the vocab projection; (rows parallel, vocab arbitrary) grid."""
    R, H = h.shape
    N = w.shape[1]
    chip = _chip_vmem_bytes()
    tm, tn = _plan_tiles(R, H, N, _itemsize(h.dtype), _itemsize(w.dtype),
                         _itemsize(out_dtype), budget=int(chip * 0.55),
                         extra_row_bytes=H * _itemsize(ln_dtype))
    R_pad, N_pad = _round_up(R, tm), _round_up(N, tn)
    if R_pad != R:
        h = jnp.pad(h, ((0, R_pad - R), (0, 0)))
    if N_pad != N:
        w = jnp.pad(w, ((0, 0), (0, N_pad - N)))
        b = jnp.pad(b, ((0, 0), (0, N_pad - N)))
    est = (2 * tm * H * _itemsize(h.dtype) + 2 * H * tn * _itemsize(w.dtype)
           + 2 * tn * 4 + 2 * tm * tn * _itemsize(out_dtype)
           + tm * H * _itemsize(ln_dtype) + 4 * H * 4)
    out = pl.pallas_call(
        _ln_proj_kernel,
        out_shape=jax.ShapeDtypeStruct((R_pad, N_pad), out_dtype),
        grid_spec=pltpu.PrefetchScalarGridSpec(
            num_scalar_prefetch=0,
            grid=(R_pad // tm, N_pad // tn),
            in_specs=[
                pl.BlockSpec((tm, H), lambda i, j: (i, 0)),
                pl.BlockSpec((1, H), lambda i, j: (0, 0)),
                pl.BlockSpec((1, H), lambda i, j: (0, 0)),
                pl.BlockSpec((H, tn), lambda i, j: (0, j)),
                pl.BlockSpec((1, tn), lambda i, j: (0, j)),
            ],
            out_specs=pl.BlockSpec((tm, tn), lambda i, j: (i, j)),
            scratch_shapes=[pltpu.VMEM((tm, H), ln_dtype)],
        ),
        # the vocab axis stays "arbitrary": the LN scratch is filled at j==0 and
        # reused across j for the same row tile.
        compiler_params=pltpu.CompilerParams(
            dimension_semantics=("parallel", "arbitrary"),
            vmem_limit_bytes=_vmem_limit(est, chip)),
    )(h, gamma, beta, w, b)
    if R_pad != R or N_pad != N:
        out = out[:R, :N]
    return out


# ----------------------------------------------------------------------------- forward
def improved_rnn_generator_forward(tokens, params, *, matmul_dtype=jnp.bfloat16, time_chunk=32):
    """tokens: int32 [B, T]. Returns (logits [B, T, V] f32, (h_n [L,B,H], c_n [L,B,H]) f32)."""
    emb_table = params["embedding"]                 # [V, E]
    V, E = emb_table.shape
    H = params["w_hh0"].shape[1]
    L = NUM_LAYERS
    B, T = tokens.shape
    cdt = jnp.dtype(matmul_dtype)
    chip = _chip_vmem_bytes()

    # Embedding gather, directly time-major; gather-then-cast avoids casting the whole table.
    x_tbe = emb_table[tokens.T].astype(cdt)                                   # [T, B, E]

    # Weight prep: transpose for (x @ W^T) form, fuse the two LSTM biases, cast MXU operands.
    wih0_t = params["w_ih0"].T.astype(cdt)                                    # [E, 4H]
    whh0_t = params["w_hh0"].T.astype(cdt)                                    # [H, 4H]
    b0 = (params["b_ih0"] + params["b_hh0"]).reshape(1, 4 * H).astype(jnp.float32)
    # Fused layer-1 weight: [h0 ; h1] @ [W_ih1^T ; W_hh1^T]  -> one (2H, 4H) MXU operand.
    w1_t = jnp.concatenate([params["w_ih1"].T, params["w_hh1"].T], axis=0).astype(cdt)
    b1 = (params["b_ih1"] + params["b_hh1"]).reshape(1, 4 * H).astype(jnp.float32)
    lng = params["ln_w"].reshape(1, H).astype(jnp.float32)
    lnb = params["ln_b"].reshape(1, H).astype(jnp.float32)
    fcw_t = params["fc_w"].T.astype(cdt)                                      # [H, V]
    fcb = params["fc_b"].reshape(1, V).astype(jnp.float32)

    # (1) Hoisted layer-0 input pre-gates: one big parallel matmul; stored in the MXU dtype.
    pregates = _tiled_matmul_bias(x_tbe.reshape(T * B, E), wih0_t, b0, out_dtype=cdt)
    pregates = pregates.reshape(T, B, 4 * H)

    # (2) Sequential recurrence: grid = (batch chunks [parallel -> v7x 2 TCs], time [arbitrary]).
    nb = 2 if (B % 16 == 0) else 1                    # Bc must be a multiple of 8 when split
    Bc = B // nb
    Tc = _plan_time_chunk(T, Bc, H, _itemsize(cdt), _itemsize(cdt), _itemsize(cdt),
                          budget=int(chip * 0.55), max_tc=min(time_chunk, T))
    T_pad = _round_up(T, Tc)
    mask_time = (T_pad != T)
    if mask_time:
        pregates = jnp.pad(pregates, ((0, T_pad - T), (0, 0), (0, 0)))
    fuse_layer1 = (H % 128 == 0)                      # lane-aligned concat only

    rec_est = (2 * Tc * Bc * 4 * H * _itemsize(cdt) + 2 * Tc * Bc * H * _itemsize(cdt)
               + 2 * 3 * H * 4 * H * _itemsize(cdt) + 2 * 4 * H * 4
               + 6 * L * Bc * H * 4)
    # TODO(synk): mark the loop-invariant weight blocks pipeline_mode=pl.Buffered(1) to
    # reclaim their second VMEM buffer at very large H (v7x headroom).
    kernel = functools.partial(_lstm_recurrent_kernel, t_total=T,
                               mask_time=mask_time, fuse_layer1=fuse_layer1)
    h1_tbh, h_n, c_n = pl.pallas_call(
        kernel,
        out_shape=(jax.ShapeDtypeStruct((T_pad, B, H), cdt),
                   jax.ShapeDtypeStruct((L, B, H), jnp.float32),
                   jax.ShapeDtypeStruct((L, B, H), jnp.float32)),
        grid_spec=pltpu.PrefetchScalarGridSpec(
            num_scalar_prefetch=0,
            grid=(nb, T_pad // Tc),
            in_specs=[
                pl.BlockSpec((Tc, Bc, 4 * H), lambda b, t: (t, b, 0)),
                pl.BlockSpec((H, 4 * H), lambda b, t: (0, 0)),
                pl.BlockSpec((2 * H, 4 * H), lambda b, t: (0, 0)),
                pl.BlockSpec((1, 4 * H), lambda b, t: (0, 0)),
            ],
            out_specs=[
                pl.BlockSpec((Tc, Bc, H), lambda b, t: (t, b, 0)),
                pl.BlockSpec((L, Bc, H), lambda b, t: (0, b, 0)),
                pl.BlockSpec((L, Bc, H), lambda b, t: (0, b, 0)),
            ],
            scratch_shapes=[pltpu.VMEM((L, Bc, H), jnp.float32),
                            pltpu.VMEM((L, Bc, H), jnp.float32)],
        ),
        compiler_params=pltpu.CompilerParams(
            dimension_semantics=("parallel", "arbitrary"),   # strict time recurrence
            vmem_limit_bytes=_vmem_limit(rec_est, chip)),
    )(pregates, whh0_t, w1_t, b1)
    if mask_time:
        h1_tbh = h1_tbh[:T]

    # (3) Hoisted LayerNorm + vocab projection on batch-first rows -> logits already [B, T, V].
    # TODO(synk): emit h1 batch-first directly from the recurrent kernel to drop this small
    # (T*B*H, ~V/H times cheaper than the logits) transpose.
    h1_bth = jnp.transpose(h1_tbh, (1, 0, 2)).reshape(B * T, H)
    logits = _tiled_ln_proj(h1_bth, lng, lnb, fcw_t, fcb, ln_dtype=cdt).reshape(B, T, V)
    return logits, (h_n, c_n)


# ----------------------------------------------------------------------------- reference & params
def reference_forward(tokens, params):
    """Pure-JAX f32 reference of the PyTorch forward (eval mode)."""
    emb = params["embedding"][tokens]               # [B, T, E]
    B, T, _ = emb.shape
    H = params["w_hh0"].shape[1]

    def cell(x, h, c, wih, whh, bih, bhh):
        g = x @ wih.T + h @ whh.T + bih + bhh
        i = jax.nn.sigmoid(g[:, 0 * H:1 * H])
        f = jax.nn.sigmoid(g[:, 1 * H:2 * H])
        gg = jnp.tanh(g[:, 2 * H:3 * H])
        o = jax.nn.sigmoid(g[:, 3 * H:4 * H])
        c = f * c + i * gg
        h = o * jnp.tanh(c)
        return h, c

    h0 = jnp.zeros((B, H)); c0 = jnp.zeros((B, H))
    h1 = jnp.zeros((B, H)); c1 = jnp.zeros((B, H))
    outs = []
    for t in range(T):
        x = emb[:, t]
        h0, c0 = cell(x, h0, c0, params["w_ih0"], params["w_hh0"],
                      params["b_ih0"], params["b_hh0"])
        h1, c1 = cell(h0, h1, c1, params["w_ih1"], params["w_hh1"],
                      params["b_ih1"], params["b_hh1"])
        outs.append(h1)
    out = jnp.stack(outs, axis=1)                   # [B, T, H]
    mu = out.mean(-1, keepdims=True)
    var = ((out - mu) ** 2).mean(-1, keepdims=True)
    y = (out - mu) / jnp.sqrt(var + LN_EPS) * params["ln_w"] + params["ln_b"]
    logits = y @ params["fc_w"].T + params["fc_b"]
    h_n = jnp.stack([h0, h1]); c_n = jnp.stack([c0, c1])
    return logits, (h_n, c_n)


def _xavier(key, shape):
    fan_out, fan_in = shape
    bound = jnp.sqrt(6.0 / (fan_in + fan_out))
    return jax.random.uniform(key, shape, jnp.float32, -bound, bound)


def make_params(key, vocab_size, embed_dim, hidden_dim):
    V, E, H = vocab_size, embed_dim, hidden_dim
    ks = jax.random.split(key, 8)
    return {
        "embedding": _xavier(ks[0], (V, E)),
        "w_ih0": _xavier(ks[1], (4 * H, E)),
        "w_hh0": _xavier(ks[2], (4 * H, H)),
        "b_ih0": jnp.zeros((4 * H,), jnp.float32),
        "b_hh0": jnp.zeros((4 * H,), jnp.float32),
        "w_ih1": _xavier(ks[3], (4 * H, H)),
        "w_hh1": _xavier(ks[4], (4 * H, H)),
        "b_ih1": jnp.zeros((4 * H,), jnp.float32),
        "b_hh1": jnp.zeros((4 * H,), jnp.float32),
        # NOTE: nn.LayerNorm default (gamma=1) used so the output is non-trivial;
        # the module's init_weights() would zero this 1-D weight.
        "ln_w": jnp.ones((H,), jnp.float32),
        "ln_b": jnp.zeros((H,), jnp.float32),
        "fc_w": _xavier(ks[5], (V, H)),
        "fc_b": jnp.zeros((V,), jnp.float32),
    }


if __name__ == "__main__":
    vocab_size, embed_dim, hidden_dim = 64, 32, 32
    batch, seq = 2, 8

    key = jax.random.PRNGKey(0)
    k_par, k_tok = jax.random.split(key)
    params = make_params(k_par, vocab_size, embed_dim, hidden_dim)
    tokens = jax.random.randint(k_tok, (batch, seq), 0, vocab_size, dtype=jnp.int32)

    ref_logits, (ref_h, ref_c) = reference_forward(tokens, params)

    # f32 MXU-operand path: exact-semantics check against the pure-JAX reference.
    logits, (h_n, c_n) = improved_rnn_generator_forward(tokens, params,
                                                        matmul_dtype=jnp.float32)
    jax.block_until_ready(logits)
    jax.block_until_ready(h_n)
    jax.block_until_ready(c_n)
    np.testing.assert_allclose(np.asarray(logits), np.asarray(ref_logits), rtol=2e-5, atol=2e-5)
    np.testing.assert_allclose(np.asarray(h_n), np.asarray(ref_h), rtol=2e-5, atol=2e-5)
    np.testing.assert_allclose(np.asarray(c_n), np.asarray(ref_c), rtol=2e-5, atol=2e-5)

    # bf16 default path (recommended on v5e/v6e/v7x): loose sanity tolerance only;
    # gate math / LN statistics / c-state stay f32, accumulation is f32.
    logits_bf, (h_bf, c_bf) = improved_rnn_generator_forward(tokens, params)
    jax.block_until_ready(logits_bf)
    np.testing.assert_allclose(np.asarray(logits_bf), np.asarray(ref_logits),
                               rtol=1.5e-1, atol=1.5e-1)
    np.testing.assert_allclose(np.asarray(h_bf), np.asarray(ref_h), rtol=1.5e-1, atol=1.5e-1)
    np.testing.assert_allclose(np.asarray(c_bf), np.asarray(ref_c), rtol=1.5e-1, atol=1.5e-1)

    print("KERNEL_OK")
</pallas_src>

<mosaic_0001>
module attributes {stable_mosaic.version = 11 : i64} {
  func.func @_matmul_bias_kernel(%arg0: i32, %arg1: i32, %arg2: memref<16x32xf32, #tpu.memory_space<vmem>>, %arg3: memref<32x128xf32, #tpu.memory_space<vmem>>, %arg4: memref<1x128xf32, #tpu.memory_space<vmem>>, %arg5: memref<16x128xf32, #tpu.memory_space<vmem>>) attributes {dimension_semantics = [#tpu.dimension_semantics<parallel>, #tpu.dimension_semantics<parallel>], iteration_bounds = array<i64: 1, 1>, scalar_prefetch = 0 : i64, scratch_operands = 0 : i64, tpu.core_type = #tpu.core_type<tc>, window_params = [{transform_indices = @transform_0, window_bounds = array<i64: 16, 32>}, {transform_indices = @transform_1, window_bounds = array<i64: 32, 128>}, {transform_indices = @transform_2, window_bounds = array<i64: 1, 128>}, {transform_indices = @transform_3, window_bounds = array<i64: 16, 128>}]} {
    %c0 = arith.constant 0 : index
    %c0_0 = arith.constant 0 : index
    %0 = vector.load %arg2[%c0, %c0_0] : memref<16x32xf32, #tpu.memory_space<vmem>>, vector<16x32xf32>
    %c0_1 = arith.constant 0 : index
    %c0_2 = arith.constant 0 : index
    %1 = vector.load %arg3[%c0_1, %c0_2] : memref<32x128xf32, #tpu.memory_space<vmem>>, vector<32x128xf32>
    %cst = arith.constant dense<0.000000e+00> : vector<16x128xf32>
    %2 = tpu.matmul %0, %1, %cst {dimension_numbers = #tpu.dot_dimension_numbers<[1], [0], [0], [1], [0, 0, 1, 1], [], []>} : vector<16x32xf32>, vector<32x128xf32>, vector<16x128xf32> -> vector<16x128xf32>
    %c0_3 = arith.constant 0 : index
    %c0_4 = arith.constant 0 : index
    %3 = vector.load %arg4[%c0_3, %c0_4] : memref<1x128xf32, #tpu.memory_space<vmem>>, vector<1x128xf32>
    %4 = vector.broadcast %3 : vector<1x128xf32> to vector<16x128xf32>
    %5 = arith.addf %2, %4 : vector<16x128xf32>
    %c0_5 = arith.constant 0 : index
    %c0_6 = arith.constant 0 : index
    %6 = vector.load %arg5[%c0_5, %c0_6] : memref<16x128xf32, #tpu.memory_space<vmem>>, vector<16x128xf32>
    tpu.vector_store %arg5[%c0_5, %c0_6], %5 {strides = array<i32>} : memref<16x128xf32, #tpu.memory_space<vmem>>, vector<16x128xf32>,
    return
  }
  func.func @transform_0(%arg0: i32, %arg1: i32) -> (i32, i32) {
    %c0_i32 = arith.constant 0 : i32
    %c0_i32_0 = arith.constant 0 : i32
    return %arg0, %c0_i32 : i32, i32
  }
  func.func @transform_1(%arg0: i32, %arg1: i32) -> (i32, i32) {
    %c0_i32 = arith.constant 0 : i32
    %c0_i32_0 = arith.constant 0 : i32
    return %c0_i32, %arg1 : i32, i32
  }
  func.func @transform_2(%arg0: i32, %arg1: i32) -> (i32, i32) {
    %c0_i32 = arith.constant 0 : i32
    %c0_i32_0 = arith.constant 0 : i32
    return %c0_i32, %arg1 : i32, i32
  }
  func.func @transform_3(%arg0: i32, %arg1: i32) -> (i32, i32) {
    %c0_i32 = arith.constant 0 : i32
    return %arg0, %arg1 : i32, i32
  }
}

</mosaic_0001>

<bundles_post_ra>
// kernel: tpu_custom_call.1
= control target key start
LH: loop header
LB: loop body
LE: loop exit
PB: predicated region body
PF: predicated region fallthrough
CT: control target
= control target key end

     0   :  { %8 = vsyncpa [#allocation3], 0  ;;  %s336_s0 = inlined_call_operand.hbm [shape: f32[16,32], index: 0, kind: input, shape index: {}]   ;;  %s337_s1 = inlined_call_operand.hbm [shape: f32[32,128], index: 1, kind: input, shape index: {}]   ;;  %s338_s2 = inlined_call_operand.vmem [shape: f32[1,128], index: 2, kind: input, shape index: {}]   ;;  %s339_s3 = inlined_call_operand.hbm [shape: f32[16,128], index: 3, kind: output, shape index: {}]  }
   0x1   :  { %9 = vsyncpa [#allocation6], 0 }
   0x2   :  { %10 = vsyncpa [#allocation4], 0  ;;  %s263_s12 = smov [#allocation2]   ;;  %s191_s16 = scalar_lea.hbm %s336_s0, 256 }
   0x3   :  { %s16_s13 = sshll.u32 %s263_s12, 4  ;;  %p192_p0 = scmp.ne.s32.totalorder %s336_s0, %s191_s16  ;;  %s17_s13 = int_to_ptr.vmem [resolvable:$true] %s16_s13 }
   0x4   :  { %p195_p1 = scmp.lt.u32.totalorder %s191_s16, %s336_s0 }
   0x6   :  { %p197_p2 = pnand %p195_p1, %p192_p0 }
   0x8   :  { %200 = shalt.err (!%p197_p2)
}
   0x9   :  { %s201_s21 = scalar_lea.vmem %s17_s13, 256  ;;  %p206_p4 = scmp.lt.s32.totalorder %s17_s13, %s17_s13 }
   0xa   :  { %p202_p3 = scmp.ne.s32.totalorder %s17_s13, %s201_s21  ;;  %p207_p5 = scmp.lt.s32.totalorder %s201_s21, %s201_s21 }
   0xc   :  { %p208_p6 = por %p207_p5, %p206_p4 }
   0xe   :  { %p209_p7 = pnand %p208_p6, %p202_p3 }
  0x10   :  { %212 = shalt.err (!%p209_p7)
}
  0x11   :  { %s264_s22 = smov 128   ;;  %s265_s23 = smov 8  }
  0x12   :  { %22 = dma.hbm_to_vmem [thread:$0]  %s336_s0, 256, %s17_s13, [#allocation3], %s264_s22, %s264_s22, %s265_s23  }
  0x13   :  { %s266_s26 = smov [#allocation5]   ;;  %s213_s30 = scalar_lea.hbm %s337_s1, 512 }
  0x14   :  { %s28_s27 = sshll.u32 %s266_s26, 4  ;;  %p214_p8 = scmp.ne.s32.totalorder %s337_s1, %s213_s30  ;;  %s29_s27 = int_to_ptr.vmem [resolvable:$true] %s28_s27 }
  0x15   :  { %p217_p9 = scmp.lt.u32.totalorder %s213_s30, %s337_s1 }
  0x17   :  { %p219_p10 = pnand %p217_p9, %p214_p8 }
  0x19   :  { %222 = shalt.err (!%p219_p10)
}
  0x1a   :  { %s223_s8 = scalar_lea.vmem %s29_s27, 512  ;;  %p228_p12 = scmp.lt.s32.totalorder %s29_s27, %s29_s27 }
  0x1b   :  { %p224_p11 = scmp.ne.s32.totalorder %s29_s27, %s223_s8  ;;  %p229_p13 = scmp.lt.s32.totalorder %s223_s8, %s223_s8 }
  0x1d   :  { %p230_p0 = por %p229_p13, %p228_p12 }
  0x1f   :  { %p231_p1 = pnand %p230_p0, %p224_p11 }
  0x21   :  { %234 = shalt.err (!%p231_p1)
}
  0x22   :  { %34 = dma.hbm_to_vmem [thread:$0]  %s337_s1, 512, %s29_s27, [#allocation6], %s264_s22, %s264_s22, %s265_s23  }
  0x23   :  { %257 = dma.done.wait [#allocation3], 256  }
  0x24   :  { %258 = vsyncadd [#allocation3], 4294967040 }
  0x25   :  { %259 = dma.done.wait [#allocation6], 512  }
  0x26   :  { %260 = vsyncadd [#allocation6], 4294966784  ;;  %vm56_vm0 = vcmask 261120   ;;  %v45_v0 = vld [vmem:[#allocation5] sm:$0xff]  ;;  %v46_v1 = vld [vmem:[#allocation5 + $0x8] sm:$0xff]  ;;  %s267_s11 = smov [#allocation7]  }
  0x27   :  { %v47_v2 = vld [vmem:[#allocation5 + $0x10] sm:$0xff]  ;;  %v178_v3 = vpack.c.bf16 %v46_v1, %v45_v0  ;;  %v48_v4 = vld [vmem:[#allocation5 + $0x18] sm:$0xff]  ;;  %s145_s12 = sshll.u32 %s267_s11, 4  ;;  %s146_s12 = int_to_ptr.vmem [resolvable:$true] %s145_s12 }
  0x28   :  { %v43_v5 = vld [vmem:[#allocation2] sm:$0xff]  ;;  %v182_v6 = vpack.c.bf16 %v48_v4, %v47_v2  ;;  %v44_v7 = vld [vmem:[#allocation2 + $0x8] sm:$0xff]  ;;  %s235_s13 = scalar_lea.vmem %s146_s12, 256  ;;  %p240_p3 = scmp.lt.s32.totalorder %s146_s12, %s146_s12 }
  0x29   :  { %175 = vmatprep.mubr.msk.f32.mxu0 %vm56_vm0, %v43_v5  ;;  %179 = vmatprep.subr.bf16.mxu0 %v178_v3  ;;  %v158_v8 = vld [vmem:[%s338_s2] ss:$0 sm:$0xff]  ;;  %p236_p2 = scmp.ne.s32.totalorder %s146_s12, %s235_s13  ;;  %p241_p4 = scmp.lt.s32.totalorder %s235_s13, %s235_s13 }
  0x2a   :  { %181 = vmatpush3.bf16.msra.mxu0 %v178_v3 }
  0x2b   :  { %183 = vmatprep.subr.bf16.mxu0 %v182_v6  ;;  %p242_p5 = por %p241_p4, %p240_p3 }
  0x2d   :  { %p243_p6 = pnand %p242_p5, %p236_p2 }
  0x2e   :  { %185 = vmatpush3.bf16.msra.mxu0 %v182_v6 }
  0x31   :  { %176 = vmatmul.mubr.msk.f32.vlgmr.msra.gmra.mrb[0].mxu0 %vm56_vm0, %v44_v7 }
 0x104   :  { %v177_v9 = vpop.f32.mrb[0].mxu0 }
 0x105   :  { %v135_v10 = vadd.f32 %v177_v9, %v158_v8  ;;  %v129_v11 = vpop.f32.mrb[1].mxu0 }
 0x106   :  { %v130_v12 = vadd.f32 %v158_v8, %v129_v11 }
 0x107   :  { %139 = vst [vmem:[#allocation7 + $0x8] sm:$0xff] %v135_v10 }
 0x108   :  { %138 = vst [vmem:[#allocation7] sm:$0xff] %v130_v12 }
 0x109   :  { %246 = shalt.err (!%p243_p6)
}
 0x10a   :  { %s247_s2 = scalar_lea.hbm %s339_s3, 256 }
 0x10b   :  { %p248_p7 = scmp.ne.s32.totalorder %s339_s3, %s247_s2  ;;  %p251_p8 = scmp.lt.u32.totalorder %s247_s2, %s339_s3 }
 0x10d   :  { %p253_p9 = pnand %p251_p8, %p248_p7 }
 0x10f   :  { %256 = shalt.err (!%p253_p9)
}
 0x110   :  { %151 = dma.vmem_to_hbm [thread:$0]  %s146_s12, 256, %s339_s3, [#allocation4], %s264_s22, %s264_s22, %s265_s23  }
 0x111   :  { %261 = dma.done.wait [#allocation4], 256  }
 0x112   :  { %262 = vsyncadd [#allocation4], 4294967040 }
 0x113   :  { %155 = vsyncpa [#allocation3], 1 }
 0x114   :  { %156 = vsyncpa [#allocation6], 1 }
 0x115   :  { %157 = vsyncpa [#allocation4], 1 }

</bundles_post_ra>
